<compile_context>
chip_gen: v6e
topology: v6e:2x2x1
jax: 0.10.0
libtpu: 0.0.40
codegen_flags: <defaults>
</compile_context>

<pallas_src>
import math

import jax
import jax.numpy as jnp
from jax.experimental import pallas as pl
from jax.experimental.pallas import tpu as pltpu


def _round_up(x, m):
    return (x + m - 1) // m * m


# ---------------------------------------------------------------------------
# 1. Farthest point sampling (deterministic start at point 0, as in
#    pytorch3d.sample_farthest_points with random_start_point=False).
# ---------------------------------------------------------------------------
def farthest_point_sampling(xyz, n_samples):
    """xyz: (B, N, 3) -> indices (B, n_samples) int32."""
    # TODO(synk): FPS is an inherently sequential argmax recurrence; kept as a JAX
    # lax.fori_loop rather than a Pallas kernel (can dominate wall time at large N/nsample).
    def per_batch(pts):
        d0 = jnp.sum((pts - pts[0]) ** 2, axis=-1)
        idx0 = jnp.zeros((n_samples,), jnp.int32)

        def body(i, state):
            dist, idx = state
            new_idx = jnp.argmax(dist).astype(jnp.int32)
            idx = idx.at[i].set(new_idx)
            d = jnp.sum((pts - pts[new_idx]) ** 2, axis=-1)
            return jnp.minimum(dist, d), idx

        _, idx = jax.lax.fori_loop(1, n_samples, body, (d0, idx0))
        return idx

    return jax.vmap(per_batch)(xyz)


# ---------------------------------------------------------------------------
# 2. Pairwise squared distances (centers vs. all points) — Pallas / MXU.
#    d2[s, n] = |c_s|^2 + |x_n|^2 - 2 c_s . x_n
#    ||c||^2 and ||x||^2 are precomputed in XLA; N is tiled in multiples of 128
#    (lane-dense stores, bounded per-step VMEM), S is padded to a multiple of 8.
# ---------------------------------------------------------------------------
def _sqdist_kernel(c_ref, c2_ref, xt_ref, x2_ref, o_ref):
    c = c_ref[0]                                                    # (S_pad, 3)
    xt = xt_ref[0]                                                  # (3, Nt)
    cx = jnp.dot(c, xt, preferred_element_type=jnp.float32)        # MXU, (S_pad, Nt)
    o_ref[0] = c2_ref[0] + x2_ref[0] - 2.0 * cx


def pairwise_sqdist(centers, xyz, *, n_tile=512):
    """centers: (B, S, 3), xyz: (B, N, 3) -> (B, S, N) squared distances (f32)."""
    B, S, _ = centers.shape
    N = xyz.shape[1]

    S_pad = _round_up(max(S, 8), 8)
    nt = min(n_tile, _round_up(N, 128))
    N_pad = _round_up(N, nt)

    c = centers.astype(jnp.float32)
    if S_pad != S:
        c = jnp.pad(c, ((0, 0), (0, S_pad - S), (0, 0)))
    xt = jnp.transpose(xyz.astype(jnp.float32), (0, 2, 1))          # (B, 3, N)
    if N_pad != N:
        xt = jnp.pad(xt, ((0, 0), (0, 0), (0, N_pad - N)))
    c2 = jnp.sum(c * c, axis=-1, keepdims=True)                     # (B, S_pad, 1)
    x2 = jnp.sum(xt * xt, axis=1, keepdims=True)                    # (B, 1, N_pad)

    out = pl.pallas_call(
        _sqdist_kernel,
        out_shape=jax.ShapeDtypeStruct((B, S_pad, N_pad), jnp.float32),
        grid=(B, N_pad // nt),
        in_specs=[
            pl.BlockSpec((1, S_pad, 3), lambda b, n: (b, 0, 0)),
            pl.BlockSpec((1, S_pad, 1), lambda b, n: (b, 0, 0)),
            pl.BlockSpec((1, 3, nt), lambda b, n: (b, 0, n)),
            pl.BlockSpec((1, 1, nt), lambda b, n: (b, 0, n)),
        ],
        out_specs=pl.BlockSpec((1, S_pad, nt), lambda b, n: (b, 0, n)),
        compiler_params=pltpu.CompilerParams(
            dimension_semantics=("parallel", "parallel")),
    )(c, c2, xt, x2)
    return out[:, :S, :N]


# ---------------------------------------------------------------------------
# 4. Fused grouped MLP (1x1 conv + folded BN + ReLU stack) + max over K.
#    The block is (g_blk*K, C_in): one big matmul per layer keeps the weights
#    resident in the MXU, then a single reshape + max over K finishes the group.
# ---------------------------------------------------------------------------
def _make_group_mlp_kernel(n_layers, K, g_blk):
    def kernel(*refs):
        x_ref = refs[0]
        param_refs = refs[1:1 + 2 * n_layers]
        o_ref = refs[1 + 2 * n_layers]
        h = x_ref[...]                                              # (g_blk*K, C_in), compute dtype
        for l in range(n_layers):
            w = param_refs[2 * l][...]                              # (C_l, C_{l+1}), compute dtype
            b = param_refs[2 * l + 1][...]                          # (1, C_{l+1}), f32
            h = jnp.dot(h, w, preferred_element_type=jnp.float32) + b
            h = jnp.maximum(h, 0.0)                                 # ReLU in f32
            if l < n_layers - 1:
                h = h.astype(w.dtype)                               # back to compute dtype for next MXU pass
        # max-pool over the K neighbours of each group
        h = jnp.max(h.reshape(g_blk, K, h.shape[-1]), axis=1)
        o_ref[...] = h.astype(o_ref.dtype)
    return kernel


def group_mlp_maxpool(grouped, weights, biases, *, g_block=128):
    """grouped: (B, S, K, C_in_padded) in the compute dtype (f32 or bf16);
    weights[l]: (C_in_l, C_out_l) f32 (folded conv+BN); biases[l]: (C_out_l,) f32.
    Returns (B, S, C_out_last) f32 = max_k MLP(grouped[..., k, :])."""
    B, S, K, C_in = grouped.shape
    G = B * S
    n_layers = len(weights)
    weights = [jnp.asarray(w, jnp.float32) for w in weights]
    biases = [jnp.asarray(b, jnp.float32) for b in biases]

    # Pad layer-1 input rows to match the (channel-padded) grouped tensor.
    if weights[0].shape[0] != C_in:
        weights[0] = jnp.pad(weights[0], ((0, C_in - weights[0].shape[0]), (0, 0)))
    # Keep the output store lane-dense: pad the last layer to a multiple of 128 columns.
    C_last = weights[-1].shape[1]
    C_last_pad = _round_up(max(C_last, 128), 128)
    if C_last_pad != C_last:
        weights[-1] = jnp.pad(weights[-1], ((0, 0), (0, C_last_pad - C_last)))
        biases[-1] = jnp.pad(biases[-1], (0, C_last_pad - C_last))

    cdtype = grouped.dtype
    itemsize = grouped.dtype.itemsize
    c_mid_max = max(int(w.shape[1]) for w in weights)

    # (G*K, C_in) is a free, contiguous reshape — no HBM transpose pass.
    x = grouped.reshape(G * K, C_in)

    # --- tile-size selection --------------------------------------------------
    # Conservative per-step VMEM budget (double-buffered streamed input, output tile,
    # live f32 intermediates) so the same choice also fits v7x's 64 MiB VMEM.
    budget = 12 << 20
    per_group = (2 * K * C_in * itemsize + 2 * C_last_pad * 4 + 3 * K * c_mid_max * 4)
    g_blk = max(1, min(g_block, budget // max(per_group, 1), G))
    # keep >= 2 grid steps so the ("parallel",) grid can shard across v7x's two TensorCores
    if G >= 2 and (G + g_blk - 1) // g_blk < 2:
        g_blk = (G + 1) // 2
    # rows-per-block must satisfy the sublane tiling constraint
    row_mult = 16 if itemsize == 2 else 8
    while (g_blk * K) % row_mult != 0:
        g_blk += 1
    G_pad = _round_up(G, g_blk)
    if G_pad != G:
        x = jnp.pad(x, ((0, (G_pad - G) * K), (0, 0)))

    flat_params = []
    in_specs = [pl.BlockSpec((g_blk * K, C_in), lambda i: (i, 0))]
    param_bytes = 0
    for w, b in zip(weights, biases):
        wq = w.astype(cdtype)                    # bf16 (or f32) MXU operands
        b2 = b.reshape(1, -1)                    # bias stays f32 (post-accumulation add)
        flat_params += [wq, b2]
        in_specs += [
            pl.BlockSpec(wq.shape, lambda i: (0, 0)),
            pl.BlockSpec(b2.shape, lambda i: (0, 0)),
        ]
        param_bytes += wq.size * itemsize + b2.size * 4

    flops = 2 * G_pad * K * sum(int(w.shape[0]) * int(w.shape[1]) for w in weights)
    bytes_accessed = x.size * itemsize + param_bytes + G_pad * C_last_pad * 4
    vmem_limit = int(min(max(2 * (per_group * g_blk + 2 * param_bytes) + (1 << 20),
                             32 << 20), 48 << 20))

    out = pl.pallas_call(
        _make_group_mlp_kernel(n_layers, K, g_blk),
        out_shape=jax.ShapeDtypeStruct((G_pad, C_last_pad), jnp.float32),
        grid=(G_pad // g_blk,),
        in_specs=in_specs,
        out_specs=pl.BlockSpec((g_blk, C_last_pad), lambda i: (i, 0)),
        compiler_params=pltpu.CompilerParams(
            dimension_semantics=("parallel",),
            vmem_limit_bytes=vmem_limit),
        cost_estimate=pl.CostEstimate(flops=flops, transcendentals=0,
                                      bytes_accessed=bytes_accessed),
    )(x, *flat_params)

    return out[:G, :C_last].reshape(B, S, C_last)


def fold_conv_bn(conv_w, conv_b, gamma, beta, mean, var, eps=1e-5):
    """Fold inference-mode BatchNorm2d into a 1x1 conv.
    conv_w: (C_out, C_in), conv_b: (C_out,). Returns (W_eff (C_in, C_out), b_eff (C_out,)),
    pre-transposed once so the kernel does a plain x @ W matmul."""
    scale = gamma / jnp.sqrt(var + eps)
    w_eff = (conv_w * scale[:, None]).T
    b_eff = scale * (conv_b - mean) + beta
    return w_eff.astype(jnp.float32), b_eff.astype(jnp.float32)


# ---------------------------------------------------------------------------
# Full forward (PointNet2SetAbstraction.forward)
# ---------------------------------------------------------------------------
def pointnet2_set_abstraction(xyz, points, layer_params, *, nsample, npoints,
                              concat_xyz=True, g_block=128,
                              compute_dtype=jnp.bfloat16):
    """xyz: (B, N, 3), points: (B, N, D).
    layer_params: list of dicts with conv_w (C_out, C_in), conv_b, bn_gamma, bn_beta,
                  bn_mean, bn_var (inference-mode BatchNorm running stats)."""
    B = xyz.shape[0]
    D = points.shape[-1]

    # 1. FPS centers
    fps_idx = farthest_point_sampling(xyz, nsample)                   # (B, S)
    centers = jax.vmap(lambda p, i: p[i])(xyz, fps_idx)               # (B, S, 3)

    # 2. kNN grouping: Pallas distance matmul + top-k selection
    d2 = pairwise_sqdist(centers, xyz)                                # (B, S, N)
    # TODO(synk): top-k neighbour selection has no clean Pallas primitive; uses jax.lax.top_k.
    _, nn_idx = jax.lax.top_k(-d2, npoints)                           # (B, S, K)

    # 3. gather neighbours, subtract centers, concat with point features.
    # Channel padding (to a multiple of 8) and the cast to the compute dtype are folded
    # into the same concatenate, so the grouped tensor hits HBM exactly once, already in
    # its kernel-ready (G*K, C_in_pad) layout.
    # TODO(synk): fusing this gather into the MLP kernel (DMA gather from HBM driven by
    # scalar-prefetched nn_idx) would remove this HBM round trip entirely.
    gather = jax.vmap(lambda p, i: p[i])
    grouped_xyz = gather(xyz, nn_idx) - centers[:, :, None, :]        # (B, S, K, 3), f32
    grouped_feat = gather(points, nn_idx)                             # (B, S, K, D)
    use_xyz = concat_xyz and (D != 3)
    parts = [grouped_xyz, grouped_feat] if use_xyz else [grouped_feat]
    c_in = sum(int(p.shape[-1]) for p in parts)
    c_in_pad = _round_up(max(c_in, 8), 8)
    if c_in_pad != c_in:
        parts.append(jnp.zeros(grouped_feat.shape[:3] + (c_in_pad - c_in,), compute_dtype))
    grouped = jnp.concatenate([p.astype(compute_dtype) for p in parts], axis=-1)

    # 4. fused 1x1-conv/BN/ReLU MLP + max over K (Pallas; bf16 MXU, f32 accumulate)
    # TODO(synk): BatchNorm2d is applied in inference mode (running stats folded into the conv);
    # training-mode batch statistics are not computed in-kernel.
    weights, biases = [], []
    for p in layer_params:
        w, b = fold_conv_bn(p["conv_w"], p["conv_b"], p["bn_gamma"], p["bn_beta"],
                            p["bn_mean"], p["bn_var"])
        weights.append(w)
        biases.append(b)
    new_points = group_mlp_maxpool(grouped, weights, biases, g_block=g_block)

    return centers, new_points


# ---------------------------------------------------------------------------
# Pure-JAX reference (explicit BN math, all f32, no Pallas) for verification.
# ---------------------------------------------------------------------------
def _reference(xyz, points, layer_params, *, nsample, npoints, concat_xyz=True, eps=1e-5):
    fps_idx = farthest_point_sampling(xyz, nsample)
    centers = jax.vmap(lambda p, i: p[i])(xyz, fps_idx)
    d2 = jnp.sum((centers[:, :, None, :] - xyz[:, None, :, :]) ** 2, axis=-1)
    _, nn_idx = jax.lax.top_k(-d2, npoints)
    gather = jax.vmap(lambda p, i: p[i])
    grouped_xyz = gather(xyz, nn_idx) - centers[:, :, None, :]
    grouped_feat = gather(points, nn_idx)
    h = jnp.concatenate([grouped_xyz, grouped_feat], axis=-1)
    if not (concat_xyz and points.shape[-1] != 3):
        h = h[..., 3:]
    for p in layer_params:
        h = jnp.einsum("bskc,oc->bsko", h, p["conv_w"]) + p["conv_b"]
        h = (h - p["bn_mean"]) / jnp.sqrt(p["bn_var"] + eps) * p["bn_gamma"] + p["bn_beta"]
        h = jnp.maximum(h, 0.0)
    return centers, jnp.max(h, axis=2)


if __name__ == "__main__":
    # Small config: B=2 clouds of N=64 points with D=4 features,
    # nsample=8 FPS centers, npoints=16 neighbours/group, MLP channels (7 -> 64 -> 128).
    B, N, D = 2, 64, 4
    nsample, npoints = 8, 16
    mlp = (64, 128)
    concat_xyz = True

    key = jax.random.PRNGKey(0)
    keys = jax.random.split(key, 4 + 6 * len(mlp))
    xyz = jax.random.normal(keys[0], (B, N, 3), jnp.float32)
    points = jax.random.normal(keys[1], (B, N, D), jnp.float32)

    c_in = D + 3 if (concat_xyz and D != 3) else D
    layer_params = []
    last = c_in
    ki = 2
    for c_out in mlp:
        bound = 1.0 / math.sqrt(last)
        layer_params.append(dict(
            conv_w=jax.random.uniform(keys[ki + 0], (c_out, last), jnp.float32, -bound, bound),
            conv_b=jax.random.uniform(keys[ki + 1], (c_out,), jnp.float32, -bound, bound),
            bn_gamma=jax.random.uniform(keys[ki + 2], (c_out,), jnp.float32, 0.5, 1.5),
            bn_beta=0.1 * jax.random.normal(keys[ki + 3], (c_out,), jnp.float32),
            bn_mean=0.1 * jax.random.normal(keys[ki + 4], (c_out,), jnp.float32),
            bn_var=jax.random.uniform(keys[ki + 5], (c_out,), jnp.float32, 0.5, 1.5),
        ))
        ki += 6
        last = c_out

    ref_xyz, ref_points = _reference(
        xyz, points, layer_params, nsample=nsample, npoints=npoints, concat_xyz=concat_xyz)

    # Performance configuration: bf16 MXU operands, f32 accumulation.
    new_xyz, new_points = pointnet2_set_abstraction(
        xyz, points, layer_params, nsample=nsample, npoints=npoints,
        concat_xyz=concat_xyz, compute_dtype=jnp.bfloat16)
    new_xyz, new_points = jax.block_until_ready((new_xyz, new_points))

    assert new_xyz.shape == (B, nsample, 3)
    assert new_points.shape == (B, nsample, mlp[-1])
    assert jnp.allclose(new_xyz, ref_xyz, atol=1e-5, rtol=1e-5)
    assert jnp.allclose(new_points, ref_points, atol=5e-2, rtol=5e-2)

    # f32 compute path: tight numerical check of the fused kernel.
    new_xyz32, new_points32 = pointnet2_set_abstraction(
        xyz, points, layer_params, nsample=nsample, npoints=npoints,
        concat_xyz=concat_xyz, compute_dtype=jnp.float32)
    new_xyz32, new_points32 = jax.block_until_ready((new_xyz32, new_points32))
    assert jnp.allclose(new_xyz32, ref_xyz, atol=1e-5, rtol=1e-5)
    assert jnp.allclose(new_points32, ref_points, atol=1e-3, rtol=1e-3)

    # sanity check the pairwise-distance kernel against a pure-JAX formula
    d2_kernel = pairwise_sqdist(ref_xyz, xyz)
    d2_ref = jnp.sum((ref_xyz[:, :, None, :] - xyz[:, None, :, :]) ** 2, axis=-1)
    assert jnp.allclose(d2_kernel, d2_ref, atol=1e-4, rtol=1e-4)

    print("KERNEL_OK")
</pallas_src>

<mosaic_0001>
module attributes {stable_mosaic.version = 11 : i64} {
  func.func @_sqdist_kernel(%arg0: i32, %arg1: i32, %arg2: memref<1x8x3xf32, #tpu.memory_space<vmem>>, %arg3: memref<1x8x1xf32, #tpu.memory_space<vmem>>, %arg4: memref<1x3x128xf32, #tpu.memory_space<vmem>>, %arg5: memref<1x1x128xf32, #tpu.memory_space<vmem>>, %arg6: memref<1x8x128xf32, #tpu.memory_space<vmem>>) attributes {dimension_semantics = [#tpu.dimension_semantics<parallel>, #tpu.dimension_semantics<parallel>], iteration_bounds = array<i64: 2, 1>, scalar_prefetch = 0 : i64, scratch_operands = 0 : i64, tpu.core_type = #tpu.core_type<tc>, window_params = [{transform_indices = @transform_0, window_bounds = array<i64: 1, 8, 3>}, {transform_indices = @transform_1, window_bounds = array<i64: 1, 8, 1>}, {transform_indices = @transform_2, window_bounds = array<i64: 1, 3, 128>}, {transform_indices = @transform_3, window_bounds = array<i64: 1, 1, 128>}, {transform_indices = @transform_4, window_bounds = array<i64: 1, 8, 128>}]} {
    %c0 = arith.constant 0 : index
    %c0_0 = arith.constant 0 : index
    %c0_1 = arith.constant 0 : index
    %0 = vector.load %arg2[%c0, %c0_0, %c0_1] : memref<1x8x3xf32, #tpu.memory_space<vmem>>, vector<1x8x3xf32>
    %1 = vector.shape_cast %0 : vector<1x8x3xf32> to vector<8x3xf32>
    %c0_2 = arith.constant 0 : index
    %c0_3 = arith.constant 0 : index
    %c0_4 = arith.constant 0 : index
    %2 = vector.load %arg4[%c0_2, %c0_3, %c0_4] : memref<1x3x128xf32, #tpu.memory_space<vmem>>, vector<1x3x128xf32>
    %3 = vector.shape_cast %2 : vector<1x3x128xf32> to vector<3x128xf32>
    %cst = arith.constant dense<0.000000e+00> : vector<8x128xf32>
    %4 = tpu.matmul %1, %3, %cst {dimension_numbers = #tpu.dot_dimension_numbers<[1], [0], [0], [1], [0, 0, 1, 1], [], []>} : vector<8x3xf32>, vector<3x128xf32>, vector<8x128xf32> -> vector<8x128xf32>
    %c0_5 = arith.constant 0 : index
    %c0_6 = arith.constant 0 : index
    %c0_7 = arith.constant 0 : index
    %5 = vector.load %arg3[%c0_5, %c0_6, %c0_7] : memref<1x8x1xf32, #tpu.memory_space<vmem>>, vector<1x8x1xf32>
    %6 = vector.shape_cast %5 : vector<1x8x1xf32> to vector<8x1xf32>
    %c0_8 = arith.constant 0 : index
    %c0_9 = arith.constant 0 : index
    %c0_10 = arith.constant 0 : index
    %7 = vector.load %arg5[%c0_8, %c0_9, %c0_10] : memref<1x1x128xf32, #tpu.memory_space<vmem>>, vector<1x1x128xf32>
    %8 = vector.shape_cast %7 : vector<1x1x128xf32> to vector<1x128xf32>
    %9 = vector.broadcast %6 : vector<8x1xf32> to vector<8x128xf32>
    %10 = vector.broadcast %8 : vector<1x128xf32> to vector<8x128xf32>
    %11 = arith.addf %9, %10 : vector<8x128xf32>
    %cst_11 = arith.constant 2.000000e+00 : f32
    %12 = vector.broadcast %cst_11 : f32 to vector<8x128xf32>
    %13 = arith.mulf %12, %4 : vector<8x128xf32>
    %14 = arith.subf %11, %13 : vector<8x128xf32>
    %c0_12 = arith.constant 0 : index
    %c0_13 = arith.constant 0 : index
    %c0_14 = arith.constant 0 : index
    %15 = vector.load %arg6[%c0_12, %c0_13, %c0_14] : memref<1x8x128xf32, #tpu.memory_space<vmem>>, vector<1x8x128xf32>
    %16 = vector.shape_cast %15 : vector<1x8x128xf32> to vector<8x128xf32>
    %17 = vector.shape_cast %14 : vector<8x128xf32> to vector<1x8x128xf32>
    tpu.vector_store %arg6[%c0_12, %c0_13, %c0_14], %17 {strides = array<i32>} : memref<1x8x128xf32, #tpu.memory_space<vmem>>, vector<1x8x128xf32>,
    return
  }
  func.func @transform_0(%arg0: i32, %arg1: i32) -> (i32, i32, i32) {
    %c0_i32 = arith.constant 0 : i32
    %c0_i32_0 = arith.constant 0 : i32
    %c0_i32_1 = arith.constant 0 : i32
    return %arg0, %c0_i32, %c0_i32_0 : i32, i32, i32
  }
  func.func @transform_1(%arg0: i32, %arg1: i32) -> (i32, i32, i32) {
    %c0_i32 = arith.constant 0 : i32
    %c0_i32_0 = arith.constant 0 : i32
    %c0_i32_1 = arith.constant 0 : i32
    return %arg0, %c0_i32, %c0_i32_0 : i32, i32, i32
  }
  func.func @transform_2(%arg0: i32, %arg1: i32) -> (i32, i32, i32) {
    %c0_i32 = arith.constant 0 : i32
    %c0_i32_0 = arith.constant 0 : i32
    return %arg0, %c0_i32, %arg1 : i32, i32, i32
  }
  func.func @transform_3(%arg0: i32, %arg1: i32) -> (i32, i32, i32) {
    %c0_i32 = arith.constant 0 : i32
    %c0_i32_0 = arith.constant 0 : i32
    return %arg0, %c0_i32, %arg1 : i32, i32, i32
  }
  func.func @transform_4(%arg0: i32, %arg1: i32) -> (i32, i32, i32) {
    %c0_i32 = arith.constant 0 : i32
    %c0_i32_0 = arith.constant 0 : i32
    return %arg0, %c0_i32, %arg1 : i32, i32, i32
  }
}

</mosaic_0001>

<bundles_post_ra>
// kernel: tpu_custom_call.1
= control target key start
LH: loop header
LB: loop body
LE: loop exit
PB: predicated region body
PF: predicated region fallthrough
CT: control target
= control target key end

     0   :  { %9 = vsyncpa [#allocation3], 0  ;;  %s793_s0 = inlined_call_operand.vmem [shape: f32[2,8,3], index: 0, kind: input, shape index: {}]   ;;  %s794_s1 = inlined_call_operand.vmem [shape: f32[2,8,1], index: 1, kind: input, shape index: {}]   ;;  %s795_s2 = inlined_call_operand.vmem [shape: f32[2,3,128], index: 2, kind: input, shape index: {}]   ;;  %s796_s3 = inlined_call_operand.vmem [shape: f32[2,1,128], index: 3, kind: input, shape index: {}]   ;;  %s797_s4 = inlined_call_operand.hbm [shape: f32[2,8,128], index: 4, kind: output, shape index: {}]  }
   0x1   :  { %11 = vsyncpa [#allocation3 + $0x1], 0  ;;  %s685_s15 = smov 0   ;;  %s687_s16 = smov 0  }
   0x2   :  { %s689_s17 = smov 0   ;;  %s691_s18 = smov 0  }
   0x3   :  { %s693_s19 = smov 0   ;;  %s695_s20 = smov 0  }
   0x4 LB: > { %s496_s21 = sadd.s32 4294967295, %s654_s20   ;;  %s497_s22 = sadd.s32 4294967294, %s654_s20   ;;  %s654_s20 = sphi %s695_s20, %s17_s20   ;;  %s650_s19 = sphi %s693_s19, %s804_s19   ;;  %s646_s18 = sphi %s691_s18, %s803_s18   ;;  %s642_s17 = sphi %s689_s17, %s802_s17   ;;  %s638_s16 = sphi %s687_s16, %s801_s16   ;;  %s634_s15 = sphi %s685_s15, %s800_s15  }
   0x5   : > { %s29_s23 = sadd.s32 1, %s650_s19  ;;  %s146_s24 = sadd.s32 1, %s642_s17 }
   0x6   : > { %p31_p0 = scmp.ge.s32.totalorder %s29_s23, 2  ;;  %p156_p1 = scmp.ne.s32.totalorder %s642_s17, %s638_s16 }
   0x7   : > { %p157_p2 = scmp.eq.s32.totalorder %s496_s21, 1  ;;  %p162_p3 = scmp.ne.s32.totalorder %s638_s16, %s634_s15 }
   0x8   : > { %s806_s23 = smov (%p31_p0, %s29_s23), 0  ;;  %p163_p5 = scmp.eq.s32.totalorder %s497_s22, 1 }
   0x9   : > { %p725_p4 = por %p157_p2, %p156_p1  ;;  %s141_s26 = ssub.s32 %s650_s19, %s806_s23 }
   0xa   : > { %p500_p6 = scmp.ge.s32.totalorder %s654_s20, 1  ;;  %p144_p7 = scmp.eq.s32.totalorder %s141_s26, 0 }
   0xb   : > { %p732_p8 = por %p163_p5, %p162_p3  ;;  %p214_p9 = scmp.lt.s32.totalorder %s654_s20, 3 }
   0xc   : > { %s738_s28 = scalar_select %p144_p7, %s642_s17, %s146_s24  }
   0xd   : > { %p215_p10 = pnand %p500_p6, %p214_p9 }
   0xe   : > { %p256_p11 = scmp.lt.s32.totalorder (!%p215_p10), %s646_s18, 1  ;;  %s253_s21 = sand.u32 (!%p215_p10), 1, %s638_s16  }
   0xf   : > { %218 = sbr.rel (%p215_p10) target bundleno = 236 (0xec), region = 36  ;;  %s509_s6 = sshll.u32 (!%p215_p10), %s646_s18, 7 }
  0x10   : > { %s387_s10 = scalar_lea.hbm (!%p215_p10), %s797_s4, %s509_s6  ;;  %s659_s12 = smov (!%p215_p10), [#allocation2]  }
  0x11   : > { %s582_s13 = sshll.u32 (!%p215_p10), %s659_s12, 4  ;;  %s583_s13 = int_to_ptr.vmem [resolvable:$false] %s582_s13 }
  0x14   : > { %v656_v0 = vmov 0.0   ;;  %vm657_vm0 = vmmov 0   ;;  %s257_s29 = scalar_select %p256_p11, %s646_s18, 1  ;;  %v658_v1 = vmov 0   ;;  %vm283_vm1 = vcmask 1042432  }
  0x15   : > { %514 = vmatprep.subr.mxu0 %v656_v0  ;;  %516 = vmatprep.mubr.msk.f32.mxu0 %vm657_vm0, %v656_v0  ;;  %vm279_vm2 = vcmask 23552   ;;  %s584_s18 = scalar_lea.vmem %s583_s13, 256 }
  0x16   : > { %577 = vset.pattern.permute.xlu0 %v658_v1  ;;  %s504_s30 = sshll.u32 %s257_s29, 2  ;;  %s502_s5 = sshll.u32 %s257_s29, 3 }
  0x17   : > { %s270_s8 = scalar_lea.vmem %s795_s2, %s504_s30  ;;  %s259_s11 = scalar_lea.vmem %s793_s0, %s502_s5 }
  0x18   : > { %v278_v2 = vld [vmem:[%s270_s8] sm:$0x7]  ;;  %s263_s14 = scalar_lea.vmem %s794_s1, %s502_s5  ;;  %s276_s26 = scalar_lea.vmem %s796_s3, %s257_s29 }
  0x19   : > { %v277_v3 = vld [vmem:[%s259_s11] sm:$0xff]  ;;  %515 = vmatpush3.msk.msra.mxu0 %vm283_vm1, %v278_v2  ;;  %s501_s30 = sshll.u32 %s253_s21, 3  ;;  %s375_s11 = scalar_lea.sflag [#allocation3], %s253_s21 }
  0x1a   : > { %v357_v4 = vld [vmem:[%s263_s14] sm:$0xff]  ;;  %517 = vmatmul.mubr.msk.f32.vlgmr.msra.gmra.mxu0 %vm279_vm2, %v277_v3  ;;  %s255_s7 = scalar_lea.vmem [#allocation2], %s501_s30 }
  0x1b   : > { %361 = vperm.xlu0 %577, %v357_v4   ;;  %v507_v5 = vld [vmem:[%s276_s26] ss:$0 sm:$0xff]  ;;  %s389_s8 = sshll.u32 %s255_s7, 4  ;;  %s390_s8 = int_to_ptr.vmem [resolvable:$true] %s389_s8 }
  0x1c   : > { %s578_s29 = scalar_lea.vmem %s390_s8, 128  ;;  %p585_p1 = scmp.lt.s32.totalorder %s390_s8, %s583_s13 }
  0x1d   : > { %p579_p12 = scmp.ne.s32.totalorder %s390_s8, %s578_s29  ;;  %p586_p2 = scmp.lt.s32.totalorder %s584_s18, %s578_s29 }
  0x1f   : > { %p580_p13 = pnand %p579_p12, %p725_p4  ;;  %p587_p3 = por %p586_p2, %p585_p1 }
  0x21   : > { %p581_p0 = pneg %p580_p13 }
  0x23   : > { %p588_p5 = pnand %p587_p3, %p581_p0 }
  0x96   : > { %v362_v6 = vpop.permute.xlu0 %361 }
  0x97   : > { %v370_v7 = vadd.f32 %v507_v5, %v362_v6 }
  0xda   : > { %v353_v8 = vpop.f32.mrf.mxu0 }
  0xdb   : > { %v371_v9 = vmul.f32 2.0, %v353_v8 }
  0xdc   : > { %v518_v10 = vpop.f32.mrf.mxu0 }
  0xdd   : > { %v372_v11 = vsub.f32 %v370_v7, %v371_v9 }
  0xdf   : > { %373 = vst [vmem:[%s255_s7] sm:$0xff] %v372_v11 }
  0xe0   : > { %591 = shalt.err (!%p588_p5)
}
  0xe1   : > { %s592_s14 = scalar_lea.hbm %s387_s10, 128  ;;  %s596_s24 = scalar_lea.hbm %s797_s4, 256 }
  0xe2   : > { %p593_p6 = scmp.ne.s32.totalorder %s387_s10, %s592_s14  ;;  %p597_p10 = scmp.lt.s32.totalorder %s387_s10, %s797_s4 }
  0xe3   : > { %p598_p11 = scmp.lt.s32.totalorder %s596_s24, %s592_s14 }
  0xe4   : > { %p594_p7 = pnand %p593_p6, %p725_p4 }
  0xe5   : > { %p599_p12 = por %p598_p11, %p597_p10 }
  0xe6   : > { %p595_p9 = pneg %p594_p7 }
  0xe8   : > { %p600_p13 = pnand %p599_p12, %p595_p9 }
  0xea   : > { %603 = shalt.err (!%p600_p13)
}
  0xeb   : > { %519 = dma.vmem_to_hbm [thread:$0]  (%p725_p4), %s390_s8, 128, %s387_s10, %s375_s11  }
  0xec PF: > { %p525_p0 = scmp.ge.s32.totalorder %s654_s20, 2  ;;  %s401_s6 = sand.u32 1, %s634_s15  }
  0xed   : > { %s402_s7 = scalar_lea.sflag [#allocation3], %s401_s6 }
  0xee   : > { %p522_p1 = pnand %p525_p0, %p732_p8 }
  0xf0   : > { %p523_p2 = pneg %p522_p1 }
  0xf2   : > { %629 = dma.done.wait (%p523_p2), %s402_s7, 128  }
  0xf3   : > { %631 = vsyncadd (%p523_p2), %s402_s7, 4294967168  ;;  %s17_s20 = sadd.s32 1, %s654_s20   ;;  %s800_s15 = smov %s638_s16 }
  0xf4   : > { %p14_p3 = scmp.ge.s32.totalorder %s17_s20, 4   ;;  %s801_s16 = smov %s642_s17 }
  0xf5   : > { %s802_s17 = smov %s738_s28  ;;  %s803_s18 = smov %s650_s19 }
  0xf6   : > { %s804_s19 = smov %s806_s23  ;;  %16 = sbr.rel (!%p14_p3) target bundleno = 4 (0x4), region = 80 }
  0xfb   :  { %407 = vsyncpa [#allocation3], 1 }
  0xfc   :  { %409 = vsyncpa [#allocation3 + $0x1], 1 }

</bundles_post_ra>
